<compile_context>
chip_gen: v7x
topology: tpu7x:2x2x1
jax: 0.10.0
libtpu: 0.0.40
codegen_flags: <defaults>
</compile_context>

<pallas_src>
import functools
import math

import jax
import jax.numpy as jnp
from jax.experimental import pallas as pl
from jax.experimental.pallas import tpu as pltpu

EPS = 1e-6


def _round_up(n, m):
    return ((n + m - 1) // m) * m


def _choose_row_block(rows, d):
    """Pick a row tile: ~2 MiB f32 output block, 8-row aligned, grid >= 2."""
    target_bytes = 2 << 20                       # ~2 MiB per output block
    rb = max(8, (target_bytes // (d * 4)) // 8 * 8)
    # Keep at least 2 grid steps when there is enough work, so megacore (v7x)
    # can shard the "parallel" row axis across both TensorCores.
    half = max(8, _round_up(pl.cdiv(rows, 2), 8))
    rb = min(rb, half)
    return min(rb, 8192)


def layernorm_kernel(ab_ref, x_ref, o_ref, *, eps, d):
    # ab_ref: SMEM (2,) f32 -> [alpha, bias]
    # x_ref:  VMEM (rb, D) in the caller's dtype; o_ref: VMEM (rb, D).
    x = x_ref[...].astype(jnp.float32)                        # (RB, D)
    alpha = ab_ref[0]
    bias = ab_ref[1]

    mean = jnp.mean(x, axis=-1, keepdims=True)                # (RB, 1)
    xc = x - mean
    # torch.std: Bessel-corrected (divide by N-1).  Two-pass (mean then
    # centered sum-of-squares) keeps numerics identical to the reference.
    var = jnp.sum(xc * xc, axis=-1, keepdims=True) * (1.0 / (d - 1))
    std = jnp.sqrt(var)
    # One exact-f32 reciprocal per row (eps added to std, as in the module),
    # then a multiply, instead of D divides per row.
    inv = pl.reciprocal(std + eps)
    o_ref[...] = ((alpha * inv) * xc + bias).astype(o_ref.dtype)


def layer_norm(x, alpha, bias, *, eps=EPS, out_dtype=jnp.float32,
               row_block=None):
    """LayerNormalisation.forward: normalise over the last dim.

    The input stays in its native dtype in HBM (the kernel promotes each tile
    to f32); output dtype defaults to f32 to match the PyTorch module.
    """
    orig_shape = x.shape
    d = orig_shape[-1]
    rows = math.prod(orig_shape[:-1]) if len(orig_shape) > 1 else 1

    x2 = x.reshape(rows, d)                                   # no cast, no pad

    rb = row_block if row_block is not None else _choose_row_block(rows, d)
    grid = (pl.cdiv(rows, rb),)                               # partial tail OK

    ab = jnp.concatenate(
        [jnp.asarray(alpha, jnp.float32).reshape(1),
         jnp.asarray(bias, jnp.float32).reshape(1)]
    )                                                         # (2,) -> SMEM

    kernel = functools.partial(layernorm_kernel, eps=eps, d=d)
    out = pl.pallas_call(
        kernel,
        out_shape=jax.ShapeDtypeStruct((rows, d), out_dtype),
        grid=grid,
        in_specs=[
            pl.BlockSpec(memory_space=pltpu.MemorySpace.SMEM),   # alpha/bias
            pl.BlockSpec((rb, d), lambda i: (i, 0)),             # row tile
        ],
        out_specs=pl.BlockSpec((rb, d), lambda i: (i, 0)),
        compiler_params=pltpu.CompilerParams(
            dimension_semantics=("parallel",),
            vmem_limit_bytes=32 << 20,
        ),
    )(ab, x2)

    return out.reshape(orig_shape)


if __name__ == "__main__":
    key = jax.random.PRNGKey(0)
    # Small shapes consistent with the module; D = 128 keeps stores lane-dense.
    B, S, D = 2, 8, 128
    x = jax.random.normal(key, (B, S, D), jnp.float32)
    # Module init: alpha = ones(1), bias = zeros(1).
    alpha = jnp.ones((1,), jnp.float32)
    bias = jnp.zeros((1,), jnp.float32)

    out = jax.block_until_ready(layer_norm(x, alpha, bias))
    assert out.shape == (B, S, D) and out.dtype == jnp.float32

    # Pure-JAX reference (same semantics: unbiased std, eps added to std).
    xf = x.astype(jnp.float32)
    mean = jnp.mean(xf, axis=-1, keepdims=True)
    std = jnp.std(xf, axis=-1, ddof=1, keepdims=True)
    ref = alpha[0] * (xf - mean) / (std + EPS) + bias[0]
    assert jnp.allclose(out, ref, atol=1e-5, rtol=1e-5)

    # Exercise the native-dtype (bf16-in) path: no wrapper cast, kernel
    # promotes per tile; output still f32 like the module.
    xb = x.astype(jnp.bfloat16)
    out_b = jax.block_until_ready(layer_norm(xb, alpha, bias))
    ref_b = (xb.astype(jnp.float32) - jnp.mean(xb.astype(jnp.float32), -1,
                                               keepdims=True))
    ref_b = alpha[0] * ref_b / (jnp.std(xb.astype(jnp.float32), -1, ddof=1,
                                        keepdims=True) + EPS) + bias[0]
    assert out_b.shape == (B, S, D) and out_b.dtype == jnp.float32
    assert jnp.allclose(out_b, ref_b, atol=1e-2, rtol=1e-2)

    print("KERNEL_OK")
</pallas_src>

<mosaic_0001>
module attributes {stable_mosaic.version = 11 : i64} {
  func.func @layernorm_kernel(%arg0: i32, %arg1: memref<2xf32, #tpu.memory_space<smem>>, %arg2: memref<8x128xf32, #tpu.memory_space<vmem>>, %arg3: memref<8x128xf32, #tpu.memory_space<vmem>>) attributes {dimension_semantics = [#tpu.dimension_semantics<parallel>], iteration_bounds = array<i64: 2>, scalar_prefetch = 0 : i64, scratch_operands = 0 : i64, tpu.core_type = #tpu.core_type<tc>, window_params = [{transform_indices = @transform_0, window_bounds = array<i64: 2>}, {transform_indices = @transform_1, window_bounds = array<i64: 8, 128>}, {transform_indices = @transform_2, window_bounds = array<i64: 8, 128>}]} {
    %c0 = arith.constant 0 : index
    %c0_0 = arith.constant 0 : index
    %0 = vector.load %arg2[%c0, %c0_0] : memref<8x128xf32, #tpu.memory_space<vmem>>, vector<8x128xf32>
    %c0_1 = arith.constant 0 : index
    %1 = memref.load %arg1[%c0_1] : memref<2xf32, #tpu.memory_space<smem>>
    %c1 = arith.constant 1 : index
    %2 = memref.load %arg1[%c1] : memref<2xf32, #tpu.memory_space<smem>>
    %cst = arith.constant dense<0.000000e+00> : vector<8xf32>
    %3 = vector.multi_reduction <add>, %0, %cst [1] : vector<8x128xf32> to vector<8xf32>
    %4 = vector.shape_cast %3 : vector<8xf32> to vector<8x1xf32>
    %cst_2 = arith.constant 1.280000e+02 : f32
    %5 = vector.broadcast %cst_2 : f32 to vector<8x1xf32>
    %6 = arith.divf %4, %5 : vector<8x1xf32>
    %7 = vector.broadcast %6 : vector<8x1xf32> to vector<8x128xf32>
    %8 = arith.subf %0, %7 : vector<8x128xf32>
    %9 = arith.mulf %8, %8 : vector<8x128xf32>
    %cst_3 = arith.constant dense<0.000000e+00> : vector<8xf32>
    %10 = vector.multi_reduction <add>, %9, %cst_3 [1] : vector<8x128xf32> to vector<8xf32>
    %11 = vector.shape_cast %10 : vector<8xf32> to vector<8x1xf32>
    %cst_4 = arith.constant 0.00787401571 : f32
    %12 = vector.broadcast %cst_4 : f32 to vector<8x1xf32>
    %13 = arith.mulf %11, %12 : vector<8x1xf32>
    %14 = math.sqrt %13 : vector<8x1xf32>
    %cst_5 = arith.constant 9.99999997E-7 : f32
    %15 = vector.broadcast %cst_5 : f32 to vector<8x1xf32>
    %16 = arith.addf %14, %15 : vector<8x1xf32>
    %17 = tpu.reciprocal %16 : vector<8x1xf32> -> vector<8x1xf32>
    %18 = vector.broadcast %1 : f32 to vector<8x1xf32>
    %19 = arith.mulf %18, %17 : vector<8x1xf32>
    %20 = vector.broadcast %19 : vector<8x1xf32> to vector<8x128xf32>
    %21 = arith.mulf %20, %8 : vector<8x128xf32>
    %22 = vector.broadcast %2 : f32 to vector<8x128xf32>
    %23 = arith.addf %21, %22 : vector<8x128xf32>
    %c0_6 = arith.constant 0 : index
    %c0_7 = arith.constant 0 : index
    %24 = vector.load %arg3[%c0_6, %c0_7] : memref<8x128xf32, #tpu.memory_space<vmem>>, vector<8x128xf32>
    tpu.vector_store %arg3[%c0_6, %c0_7], %23 {strides = array<i32>} : memref<8x128xf32, #tpu.memory_space<vmem>>, vector<8x128xf32>,
    return
  }
  func.func @transform_0(%arg0: i32) -> i32 {
    %c0_i32 = arith.constant 0 : i32
    %c0_i32_0 = arith.constant 0 : i32
    return %c0_i32 : i32
  }
  func.func @transform_1(%arg0: i32) -> (i32, i32) {
    %c0_i32 = arith.constant 0 : i32
    %c0_i32_0 = arith.constant 0 : i32
    return %arg0, %c0_i32 : i32, i32
  }
  func.func @transform_2(%arg0: i32) -> (i32, i32) {
    %c0_i32 = arith.constant 0 : i32
    %c0_i32_0 = arith.constant 0 : i32
    return %arg0, %c0_i32 : i32, i32
  }
}

</mosaic_0001>

<bundles_post_ra>
// kernel: tpu_custom_call.1
= control target key start
LH: loop header
LB: loop body
LE: loop exit
PB: predicated region body
PF: predicated region fallthrough
CT: control target
= control target key end

     0   :  { %7 = vsyncpa [#allocation5], 0  ;;  %s712_s0 = inlined_call_operand.hbm [shape: f32[2], index: 0, kind: input, shape index: {}]   ;;  %s713_s1 = inlined_call_operand.hbm [shape: f32[16,128], index: 1, kind: input, shape index: {}]   ;;  %s714_s2 = inlined_call_operand.hbm [shape: f32[16,128], index: 2, kind: output, shape index: {}]  }
   0x1   :  { %8 = vsyncpa [#allocation3], 0 }
   0x2   :  { %10 = vsyncpa [#allocation3 + $0x1], 0 }
   0x3   :  { %11 = vsyncpa [#allocation4], 0 }
   0x4   :  { %13 = vsyncpa [#allocation4 + $0x1], 0  ;;  %s503_s9 = smov 0   ;;  %s505_s10 = smov 0  }
   0x5   :  { %s507_s11 = smov 0   ;;  %s509_s12 = smov 0  }
   0x6 LB: > { %s524_s13 = sadd.s32 4294967295, %s483_s12   ;;  %s294_s14 = sadd.s32 4294967294, %s483_s12   ;;  %s483_s12 = sphi %s509_s12, %s735_s12   ;;  %s479_s11 = sphi %s507_s11, %s734_s11   ;;  %s475_s10 = sphi %s505_s10, %s733_s10   ;;  %s471_s9 = sphi %s503_s9, %s732_s9  }
   0x7   : > { %p60_p0 = scmp.ne.s32.totalorder %s475_s10, %s471_s9  ;;  %p715_p1 = scmp.eq.s32.totalorder %s524_s13, 0 }
   0x8   : > { %p90_p3 = scmp.eq.s32.totalorder %s294_s14, 1  ;;  %p295_p5 = scmp.ge.s32.totalorder %s483_s12, 1 }
   0x9   : > { %p533_p4 = por %p715_p1, %p60_p0  ;;  %p97_p7 = scmp.lt.s32.totalorder %s483_s12, 3 }
   0xa   : > { %p538_p6 = por %p90_p3, %p60_p0  ;;  %s549_s18 = sadd.s32 1, %s483_s12  }
   0xb   : > { %s718_s15 = scalar_select %p533_p4, 1, 0 }
   0xc   : > { %s719_s16 = scalar_select %p538_p6, 1, 0 }
   0xd   : > { %p543_p8 = pnand %p295_p5, %p97_p7  ;;  %s44_s19 = ssub.s32 %s483_s12, %s549_s18 }
   0xe   : > { %s47_s20 = sadd.s32 1, %s479_s11  ;;  %p562_p12 = scmp.eq.s32.totalorder %s44_s19, 0 }
   0xf   : > { %p317_p10 = pneg %p543_p8  ;;  %p54_p13 = scmp.ne.s32.totalorder %s479_s11, %s475_s10 }
  0x10   : > { %p55_p0 = scmp.eq.s32.totalorder %s483_s12, 0  ;;  %p330_p3 = scmp.lt.s32.totalorder %s483_s12, 2 }
  0x11   : > { %p558_p11 = pnand %p317_p10, %p715_p1  ;;  %s370_s25 = scalar_lea.hbm %s712_s0, 16 }
  0x12   : > { %p371_p5 = scmp.ne.s32.totalorder %s712_s0, %s370_s25  ;;  %p377_p1 = scmp.lt.u32.totalorder %s370_s25, %s712_s0 }
  0x13   : > { %p372_p7 = pneg %p558_p11 }
  0x15   : > { %p373_p10 = pnand %p372_p7, %p371_p5 }
  0x17   : > { %p374_p9 = pneg %p373_p10 }
  0x19   : > { %p379_p2 = pnand %p377_p1, %p374_p9 }
  0x1b   : > { %382 = shalt.err (!%p379_p2)
}
  0x1c   : > { %s485_s30 = smov [#allocation2]   ;;  %p56_p1 = por %p55_p0, %p54_p13 }
  0x1d   : > { %320 = dma.hbm_to_smem (!%p558_p11), %s712_s0, 16, %s485_s30, [#allocation5]  }
  0x1e   : > { %s589_s5 = scalar_select %p562_p12, %s479_s11, %s47_s20  }
  0x1f   : > { %p723_p2 = scmp.eq.s32.totalorder %s524_s13, 1  ;;  %s119_s7 = sand.u32 1, %s479_s11  }
  0x20   : > { %s299_s8 = sshll.u32 %s483_s12, 7  ;;  %s298_s14 = sshll.u32 %s119_s7, 3 }
  0x21   : > { %p601_p9 = por %p723_p2, %p54_p13  ;;  %s610_s23 = scalar_lea.hbm %s713_s1, %s299_s8 }
  0x22   : > { %s123_s20 = scalar_lea.vmem [#allocation6], %s298_s14  ;;  %p614_p11 = pnand %p330_p3, %p56_p1 }
  0x23   : > { %s724_s6 = scalar_select %p601_p9, 1, 0 }
  0x24   : > { %s130_s22 = sshll.u32 %s123_s20, 4  ;;  %s120_s25 = scalar_lea.sflag [#allocation3], %s119_s7  ;;  %s618_s22 = int_to_ptr.vmem [resolvable:$true] %s130_s22 }
  0x25   : > { %s383_s26 = scalar_lea.hbm %s610_s23, 128  ;;  %p385_p13 = pneg %p614_p11 }
  0x26   : > { %p384_p12 = scmp.ne.s32.totalorder %s610_s23, %s383_s26  ;;  %s388_s29 = scalar_lea.hbm %s713_s1, 256 }
  0x27   : > { %p389_p3 = scmp.lt.u32.totalorder %s610_s23, %s713_s1  ;;  %p390_p7 = scmp.lt.u32.totalorder %s388_s29, %s383_s26 }
  0x28   : > { %p386_p0 = pnand %p385_p13, %p384_p12  ;;  %p392_p1 = scmp.lt.u32.totalorder %s383_s26, %s610_s23 }
  0x29   : > { %p391_p10 = por %p390_p7, %p389_p3 }
  0x2a   : > { %p387_p5 = pneg %p386_p0 }
  0x2b   : > { %p393_p2 = por %p392_p1, %p391_p10 }
  0x2d   : > { %p394_p6 = pnand %p393_p2, %p387_p5 }
  0x2f   : > { %397 = shalt.err (!%p394_p6)
}
  0x30   : > { %s398_s4 = scalar_lea.vmem %s618_s22, 128  ;;  %s486_s7 = smov [#allocation6]  }
  0x31   : > { %p399_p12 = scmp.ne.s32.totalorder %s618_s22, %s398_s4  ;;  %s403_s8 = sshll.u32 %s486_s7, 4  ;;  %s404_s8 = int_to_ptr.vmem [resolvable:$false] %s403_s8 }
  0x32   : > { %s405_s14 = scalar_lea.vmem %s404_s8, 256  ;;  %p406_p4 = scmp.lt.s32.totalorder %s618_s22, %s404_s8 }
  0x33   : > { %p401_p0 = pnand %p399_p12, %p385_p13  ;;  %p407_p3 = scmp.lt.s32.totalorder %s405_s14, %s398_s4 }
  0x35   : > { %p402_p9 = pneg %p401_p0  ;;  %p408_p7 = por %p407_p3, %p406_p4 }
  0x37   : > { %p409_p10 = pnand %p408_p7, %p402_p9 }
  0x39   : > { %412 = shalt.err (!%p409_p10)
}
  0x3a   : > { %324 = dma.hbm_to_vmem [thread:$0]  (!%p614_p11), %s610_s23, 128, %s618_s22, %s120_s25  }
  0x3b   : > { %139 = sbr.rel (%p543_p8) target bundleno = 414 (0x19e), region = 28  ;;  %p726_p6 = scmp.eq.s32.totalorder (!%p543_p8), %s524_s13, 0 }
  0x42   : > { %458 = dma.done.wait (%p726_p6), [#allocation5], 16   ;;  %p727_p13 = pmov %p726_p6 }
  0x43   : > { %s652_s19 = sand.u32 1, %s475_s10   ;;  %p728_p4 = scmp.ne.s32.totalorder %s718_s15, 0 }
  0x44   : > { %460 = vsyncadd (%p727_p13), [#allocation5], 4294967280  ;;  %s302_s21 = sshll.u32 %s652_s19, 3  ;;  %s146_s20 = scalar_lea.sflag [#allocation3], %s652_s19 }
  0x45   : > { %s149_s23 = scalar_lea.vmem [#allocation6], %s302_s21 }
  0x46   : > { %462 = dma.done.wait (%p728_p4), %s146_s20, 128  }
  0x47   : > { %464 = vsyncadd (%p728_p4), %s146_s20, 4294967168 }
  0x48   : > { %154 = sfence }
  0x49   : > { %v171_v0 = vld [vmem:[%s149_s23] sm:$0xff]  ;;  %s172_s15 = sld [smem:[#allocation2]]  ;;  %s304_s17 = sld [smem:[#allocation2 + $0x1]] }
  0x4a   : > { %174 = vadd.xlane.f32.xlu0 %v171_v0  ;;  %s306_s22 = sshll.u32 %s524_s13, 7  ;;  %s170_s24 = scalar_lea.vmem [#allocation7], %s302_s21 }
  0x4b   : > { %s212_s25 = sshll.u32 %s170_s24, 4  ;;  %s668_s28 = scalar_lea.hbm %s714_s2, %s306_s22  ;;  %s670_s25 = int_to_ptr.vmem [resolvable:$true] %s212_s25 }
  0x4c   : > { %s199_s29 = scalar_lea.sflag [#allocation4], %s652_s19  ;;  %s413_s30 = scalar_lea.vmem %s670_s25, 128 }
  0x4d   : > { %p414_p8 = scmp.ne.s32.totalorder %s670_s25, %s413_s30  ;;  %p729_p9 = scmp.ne.s32.totalorder %s724_s6, 0 }
  0x4e   : > { %s487_s13 = smov [#allocation7]  }
  0x4f   : > { %v192_v13 = vstv %s172_s15  ;;  %v195_v16 = vstv %s304_s17  ;;  %p415_p11 = pnand %p414_p8, %p729_p9  ;;  %s417_s3 = sshll.u32 %s487_s13, 4  ;;  %s418_s3 = int_to_ptr.vmem [resolvable:$false] %s417_s3 }
  0x50   : > { %s419_s4 = scalar_lea.vmem %s418_s3, 256  ;;  %p420_p1 = scmp.lt.s32.totalorder %s670_s25, %s418_s3 }
  0x51   : > { %p416_p5 = pneg %p415_p11  ;;  %p421_p2 = scmp.lt.s32.totalorder %s419_s4, %s413_s30 }
  0x53   : > { %p422_p12 = por %p421_p2, %p420_p1 }
  0x55   : > { %p423_p0 = pnand %p422_p12, %p416_p5 }
  0xd7   : > { %v175_v1 = vpop.xlane.xlu0 %174 }
  0xd8   : > { %v177_v2 = vmul.f32 0.0078125, %v175_v1 }
  0xda   : > { %v178_v3 = vsub.f32 %v171_v0, %v177_v2 }
  0xdc   : > { %v179_v4 = vmul.f32 %v178_v3, %v178_v3 }
  0xde   : > { %180 = vadd.xlane.f32.xlu0 %v179_v4 }
 0x16b   : > { %v181_v5 = vpop.xlane.xlu0 %180 }
 0x16c   : > { %v182_v6 = vmul.f32 0.007874016, %v181_v5 }
 0x16e   : > { %366 = vrsqrt.f32 %v182_v6  ;;  %vm185_vm0 = vcmp.eq.f32.partialorder %v182_v6, inf  ;;  %v188_v9 = vand.u32 2147483648, %v182_v6  ;;  %vm187_vm1 = vcmp.eq.f32.partialorder %v182_v6, 0.0 }
 0x178   : > { %v367_v7 = vpop.eup %366 }
 0x179   : > { %v184_v8 = vmul.f32 %v367_v7, %v182_v6 }
 0x17b   : > { %v186_v10 = vsel %vm185_vm0, %v182_v6, %v184_v8 }
 0x17c   : > { %v189_v11 = vsel %vm187_vm1, %v188_v9, %v186_v10 }
 0x17d   : > { %v190_v12 = vadd.f32 1e-06, %v189_v11 }
 0x17f   : > { %368 = vrcp.f32 %v190_v12 }
 0x189   : > { %v369_v14 = vpop.eup %368 }
 0x18a   : > { %v193_v15 = vmul.f32 %v369_v14, %v192_v13 }
 0x18c   : > { %v194_v17 = vmul.f32 %v193_v15, %v178_v3 }
 0x18e   : > { %v196_v18 = vadd.f32 %v195_v16, %v194_v17 }
 0x190   : > { %197 = vst [vmem:[%s170_s24] sm:$0xff] %v196_v18 }
 0x191   : > { %426 = shalt.err (!%p423_p0)
}
 0x192   : > { %s427_s7 = scalar_lea.hbm %s668_s28, 128  ;;  %s431_s19 = scalar_lea.hbm %s714_s2, 256 }
 0x193   : > { %p428_p3 = scmp.ne.s32.totalorder %s668_s28, %s427_s7  ;;  %p432_p6 = scmp.lt.u32.totalorder %s668_s28, %s714_s2 }
 0x194   : > { %p433_p13 = scmp.lt.u32.totalorder %s431_s19, %s427_s7  ;;  %p435_p8 = scmp.lt.u32.totalorder %s427_s7, %s668_s28 }
 0x195   : > { %p429_p7 = pnand %p428_p3, %p729_p9 }
 0x196   : > { %p434_p4 = por %p433_p13, %p432_p6 }
 0x197   : > { %p430_p10 = pneg %p429_p7 }
 0x198   : > { %p436_p11 = por %p435_p8, %p434_p4 }
 0x19a   : > { %p437_p5 = pnand %p436_p11, %p430_p10 }
 0x19c   : > { %440 = shalt.err (!%p437_p5)
}
 0x19d   : > { %315 = dma.vmem_to_hbm [thread:$0]  (%p729_p9), %s670_s25, 128, %s668_s28, %s199_s29  }
 0x19e PF: > { %s224_s23 = sand.u32 1, %s471_s9   ;;  %p730_p1 = scmp.ne.s32.totalorder %s719_s16, 0 }
 0x19f   : > { %p731_p2 = scmp.ge.s32.totalorder %s483_s12, 2  ;;  %s225_s15 = scalar_lea.sflag [#allocation4], %s224_s23 }
 0x1a1   : > { %p326_p12 = pnand %p731_p2, %p730_p1 }
 0x1a3   : > { %466 = dma.done.wait (!%p326_p12), %s225_s15, 128  }
 0x1a4   : > { %468 = vsyncadd (!%p326_p12), %s225_s15, 4294967168  ;;  %p16_p0 = scmp.ge.s32.totalorder %s549_s18, 4   ;;  %s732_s9 = smov %s475_s10 }
 0x1a5   : > { %s733_s10 = smov %s479_s11  ;;  %s734_s11 = smov %s589_s5 }
 0x1a6   : > { %s735_s12 = smov %s549_s18  ;;  %18 = sbr.rel (!%p16_p0) target bundleno = 6 (0x6), region = 78 }
 0x1ad   :  { %230 = vsyncpa [#allocation3], 1 }
 0x1ae   :  { %232 = vsyncpa [#allocation3 + $0x1], 1 }
 0x1af   :  { %233 = vsyncpa [#allocation4], 1 }
 0x1b0   :  { %235 = vsyncpa [#allocation4 + $0x1], 1 }
 0x1b1   :  { %236 = vsyncpa [#allocation5], 1 }
 0x1b2   :  { %238 = vsyncpa [#allocation5 + $0x1], 1 }

</bundles_post_ra>
